<compile_context>
chip_gen: v7x
topology: tpu7x:2x2x1
jax: 0.10.0
libtpu: 0.0.40
codegen_flags: <defaults>
</compile_context>

<pallas_src>
import functools

import jax
import jax.numpy as jnp
from jax.experimental import pallas as pl
from jax.experimental.pallas import tpu as pltpu

P_DROP = 0.3
# drop if hash_bits < threshold  (keep prob = 1 - p)
_DROP_THRESHOLD = int(round(P_DROP * (1 << 32)))


def _rup(x: int, m: int) -> int:
    return (x + m - 1) // m * m


def _pad2(a, rows: int, cols: int):
    return jnp.pad(a, ((0, rows - a.shape[0]), (0, cols - a.shape[1])))


def _make_kernel(drop_threshold: int):
    def mlp_kernel(seed_ref, x_ref, w1_ref, b1_ref, w2_ref, b2_ref, o_ref):
        # ---- Linear 1 on the MXU (bf16 operands, f32 accumulate) + ReLU ----
        h = jnp.dot(x_ref[...], w1_ref[...], preferred_element_type=jnp.float32)
        h = jnp.maximum(h + b1_ref[...], 0.0)

        # ---- Dropout (training semantics); scale is pre-folded into W2 ----
        if drop_threshold > 0:
            tb, hp = h.shape
            # counter-based hash ("lowbias32") of (seed, global element index)
            row0 = (pl.program_id(0) * tb).astype(jnp.uint32)
            rows = row0 + jax.lax.broadcasted_iota(jnp.uint32, (tb, hp), 0)
            cols = jax.lax.broadcasted_iota(jnp.uint32, (tb, hp), 1)
            v = rows * jnp.uint32(hp) + cols
            v = v + seed_ref[0].astype(jnp.uint32) * jnp.uint32(0x9E3779B9)
            v ^= v >> 16
            v = v * jnp.uint32(0x7FEB352D)
            v ^= v >> 15
            v = v * jnp.uint32(0x846CA68B)
            v ^= v >> 16
            h = jnp.where(v >= jnp.uint32(drop_threshold), h, 0.0)

        # ---- Linear 2 on the MXU ----
        out = jnp.dot(h.astype(jnp.bfloat16), w2_ref[...],
                      preferred_element_type=jnp.float32)
        o_ref[...] = (out + b2_ref[...]).astype(o_ref.dtype)

    return mlp_kernel


@functools.partial(jax.jit, static_argnames=("training", "block_b"))
def _net_forward_impl(x, w1, b1, w2, b2, seed_arr, *, training, block_b):
    B, F = x.shape
    H = w1.shape[1]
    O = w2.shape[1]

    # Lane-pad feature / hidden / output dims to 128; sublane-pad batch to the tile.
    Fp, Hp, Op = _rup(F, 128), _rup(H, 128), _rup(O, 128)
    TB = min(_rup(B, 8), block_b)
    Bp = _rup(B, TB)
    nb = Bp // TB

    scale = (1.0 / (1.0 - P_DROP)) if training else 1.0
    thresh = _DROP_THRESHOLD if training else 0

    # Pad (zeros) and cast MXU operands to bf16; biases stay f32.
    xp = _pad2(x, Bp, Fp).astype(jnp.bfloat16)
    w1p = _pad2(w1, Fp, Hp).astype(jnp.bfloat16)
    b1p = _pad2(b1.reshape(1, -1).astype(jnp.float32), 1, Hp)
    w2p = _pad2(w2 * scale, Hp, Op).astype(jnp.bfloat16)   # fold 1/(1-p) into W2
    b2p = _pad2(b2.reshape(1, -1).astype(jnp.float32), 1, Op)

    flops = 2 * Bp * (Fp * Hp + Hp * Op)
    bytes_accessed = (xp.size * 2 + w1p.size * 2 + w2p.size * 2
                      + b1p.size * 4 + b2p.size * 4 + Bp * Op * 4 + 4)
    cost = pl.CostEstimate(flops=flops, transcendentals=0,
                           bytes_accessed=bytes_accessed)

    # VMEM budget: resident bf16 weights + f32 biases + double-buffered I/O
    # tiles + f32 intermediates, with headroom.  Capped at 64 MiB (v7x VMEM).
    vmem_bytes = (2 * (Fp * Hp + Hp * Op) + 4 * (Hp + Op)
                  + 2 * (2 * TB * Fp + 4 * TB * Op)
                  + 8 * TB * Hp + (2 << 20))
    vmem_limit = int(min(max(vmem_bytes, 4 << 20), 64 << 20))

    out_p = pl.pallas_call(
        _make_kernel(thresh),
        out_shape=jax.ShapeDtypeStruct((Bp, Op), x.dtype),
        grid=(nb,),
        in_specs=[
            pl.BlockSpec(memory_space=pltpu.MemorySpace.SMEM),  # seed (1,) i32
            pl.BlockSpec((TB, Fp), lambda i: (i, 0)),           # x batch tile
            pl.BlockSpec((Fp, Hp), lambda i: (0, 0)),           # W1 (resident)
            pl.BlockSpec((1, Hp), lambda i: (0, 0)),            # b1 (resident)
            pl.BlockSpec((Hp, Op), lambda i: (0, 0)),           # W2 (resident, pre-scaled)
            pl.BlockSpec((1, Op), lambda i: (0, 0)),            # b2 (resident)
        ],
        out_specs=pl.BlockSpec((TB, Op), lambda i: (i, 0)),
        compiler_params=pltpu.CompilerParams(
            dimension_semantics=("parallel",),
            vmem_limit_bytes=vmem_limit),
        cost_estimate=cost,
    )(seed_arr, xp, w1p, b1p, w2p, b2p)

    return out_p[:B, :O]


def net_forward(x, w1, b1, w2, b2, seed=0, *, training=True, block_b=256):
    """Forward pass of Net: Linear -> ReLU -> Dropout(0.3) -> Linear.

    x: (B, F) f32; w1: (F, H); b1: (H,) or (1, H); w2: (H, O); b2: (O,) or (1, O).
    `training=True` applies inverted dropout (scale 1/(1-p)); False disables it
    (eval-mode nn.Dropout behaviour).
    """
    seed_arr = jnp.asarray(seed, dtype=jnp.int32).reshape(1)
    return _net_forward_impl(x, w1, jnp.asarray(b1), w2, jnp.asarray(b2),
                             seed_arr, training=training, block_b=block_b)


if __name__ == "__main__":
    # Small shapes consistent with Net(n_feature, n_hidden, n_output).
    B, F, H, O = 8, 32, 64, 16

    key = jax.random.PRNGKey(0)
    kx, k1, k2, k3, k4 = jax.random.split(key, 5)

    x = jax.random.normal(kx, (B, F), jnp.float32)

    # Deterministic init mimicking torch.nn.Linear's U(-1/sqrt(fan_in), ...)
    bound1 = 1.0 / (F ** 0.5)
    w1 = jax.random.uniform(k1, (F, H), jnp.float32, -bound1, bound1)
    b1 = jax.random.uniform(k2, (H,), jnp.float32, -bound1, bound1)
    bound2 = 1.0 / (H ** 0.5)
    w2 = jax.random.uniform(k3, (H, O), jnp.float32, -bound2, bound2)
    b2 = jax.random.uniform(k4, (O,), jnp.float32, -bound2, bound2)

    out = net_forward(x, w1, b1, w2, b2, seed=0, training=True)
    out = jax.block_until_ready(out)

    assert out.shape == (B, O), out.shape
    assert bool(jnp.all(jnp.isfinite(out)))

    # Eval-mode path (no dropout) should also run and stay finite.
    out_eval = jax.block_until_ready(net_forward(x, w1, b1, w2, b2, training=False))
    assert out_eval.shape == (B, O)
    assert bool(jnp.all(jnp.isfinite(out_eval)))

    print("KERNEL_OK")
</pallas_src>

<mosaic_0001>
module attributes {stable_mosaic.version = 11 : i64} {
  func.func @mlp_kernel(%arg0: i32, %arg1: memref<1xi32, #tpu.memory_space<smem>>, %arg2: memref<8x128xbf16, #tpu.memory_space<vmem>>, %arg3: memref<128x128xbf16, #tpu.memory_space<vmem>>, %arg4: memref<1x128xf32, #tpu.memory_space<vmem>>, %arg5: memref<128x128xbf16, #tpu.memory_space<vmem>>, %arg6: memref<1x128xf32, #tpu.memory_space<vmem>>, %arg7: memref<8x128xf32, #tpu.memory_space<vmem>>) attributes {dimension_semantics = [#tpu.dimension_semantics<parallel>], iteration_bounds = array<i64: 1>, scalar_prefetch = 0 : i64, scratch_operands = 0 : i64, tpu.core_type = #tpu.core_type<tc>, window_params = [{transform_indices = @transform_0, window_bounds = array<i64: 1>}, {transform_indices = @transform_1, window_bounds = array<i64: 8, 128>}, {pipeline_mode = #tpu.pipeline_mode<synchronous>, transform_indices = @transform_2, window_bounds = array<i64: 128, 128>}, {pipeline_mode = #tpu.pipeline_mode<synchronous>, transform_indices = @transform_3, window_bounds = array<i64: 1, 128>}, {pipeline_mode = #tpu.pipeline_mode<synchronous>, transform_indices = @transform_4, window_bounds = array<i64: 128, 128>}, {pipeline_mode = #tpu.pipeline_mode<synchronous>, transform_indices = @transform_5, window_bounds = array<i64: 1, 128>}, {transform_indices = @transform_6, window_bounds = array<i64: 8, 128>}]} {
    %c0 = arith.constant 0 : index
    %c0_0 = arith.constant 0 : index
    %0 = vector.load %arg2[%c0, %c0_0] : memref<8x128xbf16, #tpu.memory_space<vmem>>, vector<8x128xbf16>
    %c0_1 = arith.constant 0 : index
    %c0_2 = arith.constant 0 : index
    %1 = vector.load %arg3[%c0_1, %c0_2] : memref<128x128xbf16, #tpu.memory_space<vmem>>, vector<128x128xbf16>
    %cst = arith.constant dense<0.000000e+00> : vector<8x128xf32>
    %2 = tpu.matmul %0, %1, %cst {dimension_numbers = #tpu.dot_dimension_numbers<[1], [0], [0], [1], [0, 0, 1, 1], [], []>} : vector<8x128xbf16>, vector<128x128xbf16>, vector<8x128xf32> -> vector<8x128xf32>
    %c0_3 = arith.constant 0 : index
    %c0_4 = arith.constant 0 : index
    %3 = vector.load %arg4[%c0_3, %c0_4] : memref<1x128xf32, #tpu.memory_space<vmem>>, vector<1x128xf32>
    %4 = vector.broadcast %3 : vector<1x128xf32> to vector<8x128xf32>
    %5 = arith.addf %2, %4 : vector<8x128xf32>
    %cst_5 = arith.constant 0.000000e+00 : f32
    %6 = vector.broadcast %cst_5 : f32 to vector<8x128xf32>
    %7 = arith.maximumf %5, %6 : vector<8x128xf32>
    %c8_i32 = arith.constant 8 : i32
    %8 = arith.muli %arg0, %c8_i32 : i32
    %9 = tpu.iota {dimensions = array<i32: 0>} : vector<8x128xi32>
    %10 = vector.broadcast %8 : i32 to vector<8x128xi32>
    %11 = arith.addi %10, %9 : vector<8x128xi32>
    %12 = tpu.iota {dimensions = array<i32: 1>} : vector<8x128xi32>
    %c128_i32 = arith.constant 128 : i32
    %13 = vector.broadcast %c128_i32 : i32 to vector<8x128xi32>
    %14 = arith.muli %11, %13 : vector<8x128xi32>
    %15 = arith.addi %14, %12 : vector<8x128xi32>
    %c0_6 = arith.constant 0 : index
    %16 = memref.load %arg1[%c0_6] : memref<1xi32, #tpu.memory_space<smem>>
    %c-1640531527_i32 = arith.constant -1640531527 : i32
    %17 = arith.muli %16, %c-1640531527_i32 : i32
    %18 = vector.broadcast %17 : i32 to vector<8x128xi32>
    %19 = arith.addi %15, %18 : vector<8x128xi32>
    %c16_i32 = arith.constant 16 : i32
    %20 = vector.broadcast %c16_i32 : i32 to vector<8x128xi32>
    %21 = arith.shrui %19, %20 : vector<8x128xi32>
    %22 = arith.xori %19, %21 : vector<8x128xi32>
    %c2146121005_i32 = arith.constant 2146121005 : i32
    %23 = vector.broadcast %c2146121005_i32 : i32 to vector<8x128xi32>
    %24 = arith.muli %22, %23 : vector<8x128xi32>
    %c15_i32 = arith.constant 15 : i32
    %25 = vector.broadcast %c15_i32 : i32 to vector<8x128xi32>
    %26 = arith.shrui %24, %25 : vector<8x128xi32>
    %27 = arith.xori %24, %26 : vector<8x128xi32>
    %c-2073254261_i32 = arith.constant -2073254261 : i32
    %28 = vector.broadcast %c-2073254261_i32 : i32 to vector<8x128xi32>
    %29 = arith.muli %27, %28 : vector<8x128xi32>
    %c16_i32_7 = arith.constant 16 : i32
    %30 = vector.broadcast %c16_i32_7 : i32 to vector<8x128xi32>
    %31 = arith.shrui %29, %30 : vector<8x128xi32>
    %32 = arith.xori %29, %31 : vector<8x128xi32>
    %c1288490189_i32 = arith.constant 1288490189 : i32
    %33 = vector.broadcast %c1288490189_i32 : i32 to vector<8x128xi32>
    %34 = arith.cmpi uge, %32, %33 : vector<8x128xi32>
    %cst_8 = arith.constant 0.000000e+00 : f32
    %35 = vector.broadcast %cst_8 : f32 to vector<8x128xf32>
    %36 = arith.select %34, %7, %35 : vector<8x128xi1>, vector<8x128xf32>
    %37 = arith.truncf %36 : vector<8x128xf32> to vector<8x128xbf16>
    %c0_9 = arith.constant 0 : index
    %c0_10 = arith.constant 0 : index
    %38 = vector.load %arg5[%c0_9, %c0_10] : memref<128x128xbf16, #tpu.memory_space<vmem>>, vector<128x128xbf16>
    %cst_11 = arith.constant dense<0.000000e+00> : vector<8x128xf32>
    %39 = tpu.matmul %37, %38, %cst_11 {dimension_numbers = #tpu.dot_dimension_numbers<[1], [0], [0], [1], [0, 0, 1, 1], [], []>} : vector<8x128xbf16>, vector<128x128xbf16>, vector<8x128xf32> -> vector<8x128xf32>
    %c0_12 = arith.constant 0 : index
    %c0_13 = arith.constant 0 : index
    %40 = vector.load %arg6[%c0_12, %c0_13] : memref<1x128xf32, #tpu.memory_space<vmem>>, vector<1x128xf32>
    %41 = vector.broadcast %40 : vector<1x128xf32> to vector<8x128xf32>
    %42 = arith.addf %39, %41 : vector<8x128xf32>
    %c0_14 = arith.constant 0 : index
    %c0_15 = arith.constant 0 : index
    %43 = vector.load %arg7[%c0_14, %c0_15] : memref<8x128xf32, #tpu.memory_space<vmem>>, vector<8x128xf32>
    tpu.vector_store %arg7[%c0_14, %c0_15], %42 {strides = array<i32>} : memref<8x128xf32, #tpu.memory_space<vmem>>, vector<8x128xf32>,
    return
  }
  func.func @transform_0(%arg0: i32) -> i32 {
    %c0_i32 = arith.constant 0 : i32
    %c0_i32_0 = arith.constant 0 : i32
    return %c0_i32 : i32
  }
  func.func @transform_1(%arg0: i32) -> (i32, i32) {
    %c0_i32 = arith.constant 0 : i32
    %c0_i32_0 = arith.constant 0 : i32
    return %arg0, %c0_i32 : i32, i32
  }
  func.func @transform_2(%arg0: i32) -> (i32, i32) {
    %c0_i32 = arith.constant 0 : i32
    %c0_i32_0 = arith.constant 0 : i32
    %c0_i32_1 = arith.constant 0 : i32
    return %c0_i32, %c0_i32_0 : i32, i32
  }
  func.func @transform_3(%arg0: i32) -> (i32, i32) {
    %c0_i32 = arith.constant 0 : i32
    %c0_i32_0 = arith.constant 0 : i32
    %c0_i32_1 = arith.constant 0 : i32
    return %c0_i32, %c0_i32_0 : i32, i32
  }
  func.func @transform_4(%arg0: i32) -> (i32, i32) {
    %c0_i32 = arith.constant 0 : i32
    %c0_i32_0 = arith.constant 0 : i32
    %c0_i32_1 = arith.constant 0 : i32
    return %c0_i32, %c0_i32_0 : i32, i32
  }
  func.func @transform_5(%arg0: i32) -> (i32, i32) {
    %c0_i32 = arith.constant 0 : i32
    %c0_i32_0 = arith.constant 0 : i32
    %c0_i32_1 = arith.constant 0 : i32
    return %c0_i32, %c0_i32_0 : i32, i32
  }
  func.func @transform_6(%arg0: i32) -> (i32, i32) {
    %c0_i32 = arith.constant 0 : i32
    %c0_i32_0 = arith.constant 0 : i32
    return %arg0, %c0_i32 : i32, i32
  }
}

</mosaic_0001>

<bundles_post_ra>
// kernel: _net_forward_impl.1
= control target key start
LH: loop header
LB: loop body
LE: loop exit
PB: predicated region body
PF: predicated region fallthrough
CT: control target
= control target key end

     0   :  { %v411_v1 = vmov 0.0   ;;  %vm412_vm0 = vmmov 0   ;;  %s521_s0 = inlined_call_operand.<no memory space> [shape: s32[1], index: 0, kind: input, shape index: {}]   ;;  %s522_s1 = inlined_call_operand.vmem [shape: bf16[8,128], index: 1, kind: input, shape index: {}]   ;;  %s523_s2 = inlined_call_operand.vmem [shape: bf16[128,128], index: 2, kind: input, shape index: {}]   ;;  %s524_s3 = inlined_call_operand.vmem [shape: f32[1,128], index: 3, kind: input, shape index: {}]   ;;  %s525_s4 = inlined_call_operand.vmem [shape: bf16[128,128], index: 4, kind: input, shape index: {}]   ;;  %s526_s5 = inlined_call_operand.vmem [shape: f32[1,128], index: 5, kind: input, shape index: {}]   ;;  %s527_s6 = inlined_call_operand.hbm [shape: f32[8,128], index: 6, kind: output, shape index: {}]  }
   0x1   :  { %v371_v0 = vld [vmem:[%s523_s2] sm:$0xff]   ;;  %328 = vmatprep.subr.bf16.mxu0 %v411_v1  ;;  %348 = vmatprep.subr.bf16.mxu1 %v411_v1  ;;  %v372_v2 = vld [vmem:[%s523_s2 + $0x8] sm:$0xff]   ;;  %v373_v3 = vld [vmem:[%s523_s2 + $0x10] sm:$0xff]  }
   0x2   :  { %329 = vmatpush3.bf16.msra.mxu0 %v371_v0  ;;  %344 = vmatprep.mubr.msk.bf16.mxu0 %vm412_vm0, %v411_v1  ;;  %v379_v4 = vld [vmem:[%s525_s4] sm:$0xff]   ;;  %v374_v5 = vld [vmem:[%s523_s2 + $0x18] sm:$0xff]   ;;  %v380_v6 = vld [vmem:[%s525_s4 + $0x8] sm:$0xff]  }
   0x3   :  { %330 = vmatprep.subr.bf16.mxu0 %v411_v1  ;;  %364 = vmatprep.mubr.msk.bf16.mxu1 %vm412_vm0, %v411_v1  ;;  %v375_v7 = vld [vmem:[%s523_s2 + $0x20] sm:$0xff]   ;;  %v381_v8 = vld [vmem:[%s525_s4 + $0x10] sm:$0xff]  }
   0x4   :  { %349 = vmatpush3.bf16.msra.mxu1 %v379_v4 }
   0x5   :  { %350 = vmatprep.subr.bf16.mxu1 %v411_v1 }
   0x6   :  { %331 = vmatpush3.bf16.msra.mxu0 %v372_v2 }
   0x7   :  { %332 = vmatprep.subr.bf16.mxu0 %v411_v1 }
   0x8   :  { %351 = vmatpush3.bf16.msra.mxu1 %v380_v6 }
   0x9   :  { %352 = vmatprep.subr.bf16.mxu1 %v411_v1 }
   0xa   :  { %333 = vmatpush3.bf16.msra.mxu0 %v373_v3 }
   0xb   :  { %334 = vmatprep.subr.bf16.mxu0 %v411_v1 }
   0xe   :  { %335 = vmatpush3.bf16.msra.mxu0 %v374_v5 }
   0xf   :  { %336 = vmatprep.subr.bf16.mxu0 %v411_v1 }
  0x10   :  { %12 = vsyncpa [#allocation4], 0  ;;  %v376_v9 = vld [vmem:[%s523_s2 + $0x28] sm:$0xff]   ;;  %353 = vmatpush3.bf16.msra.mxu1 %v381_v8  ;;  %v382_v10 = vld [vmem:[%s525_s4 + $0x18] sm:$0xff]   ;;  %v140_v18 = vlaneseq  ;;  %s149_s7 = smul.u32 2654435769, %s521_s0 }
  0x11   :  { %354 = vmatprep.subr.bf16.mxu1 %v411_v1  ;;  %v377_v11 = vld [vmem:[%s523_s2 + $0x30] sm:$0xff]   ;;  %v383_v12 = vld [vmem:[%s525_s4 + $0x20] sm:$0xff]   ;;  %v378_v13 = vld [vmem:[%s523_s2 + $0x38] sm:$0xff]   ;;  %s413_s10 = smov [#allocation3]  }
  0x12   :  { %337 = vmatpush3.bf16.msra.mxu0 %v375_v7  ;;  %v384_v14 = vld [vmem:[%s525_s4 + $0x28] sm:$0xff]   ;;  %v26_v15 = vld [vmem:[%s522_s1] sm:$0xf]  ;;  %v385_v16 = vld [vmem:[%s525_s4 + $0x30] sm:$0xff]   ;;  %v141_v19 = vshrl.u32 %v140_v18, 7  ;;  %v145_v20 = vand.u32 127, %v140_v18  ;;  %v150_v23 = vstv %s149_s7 }
  0x13   :  { %338 = vmatprep.subr.bf16.mxu0 %v411_v1  ;;  %v386_v17 = vld [vmem:[%s525_s4 + $0x38] sm:$0xff]   ;;  %v289_v33 = vld [vmem:[%s524_s3] ss:$0 sm:$0xff]  ;;  %s281_s11 = sshll.u32 %s413_s10, 4  ;;  %s282_s11 = int_to_ptr.vmem [resolvable:$true] %s281_s11 }
  0x14   :  { %355 = vmatpush3.bf16.msra.mxu1 %v382_v10  ;;  %v146_v21 = vmul.u32 128, %v141_v19  ;;  %v298_v41 = vld [vmem:[%s526_s5] ss:$0 sm:$0xff]  ;;  %s387_s3 = scalar_lea.vmem %s282_s11, 128  ;;  %p392_p1 = scmp.lt.s32.totalorder %s282_s11, %s282_s11 }
  0x15   :  { %356 = vmatprep.subr.bf16.mxu1 %v411_v1  ;;  %p388_p0 = scmp.ne.s32.totalorder %s282_s11, %s387_s3  ;;  %p393_p2 = scmp.lt.s32.totalorder %s387_s3, %s387_s3 }
  0x16   :  { %339 = vmatpush3.bf16.msra.mxu0 %v376_v9  ;;  %v147_v22 = vadd.s32 %v146_v21, %v145_v20 }
  0x17   :  { %340 = vmatprep.subr.bf16.mxu0 %v411_v1  ;;  %p394_p3 = por %p393_p2, %p392_p1 }
  0x18   :  { %357 = vmatpush3.bf16.msra.mxu1 %v383_v12  ;;  %v151_v24 = vadd.s32 %v150_v23, %v147_v22 }
  0x19   :  { %358 = vmatprep.subr.bf16.mxu1 %v411_v1  ;;  %p395_p4 = pnand %p394_p3, %p388_p0 }
  0x1a   :  { %341 = vmatpush3.bf16.msra.mxu0 %v377_v11  ;;  %v152_v25 = vshrl.u32 %v151_v24, 16 }
  0x1b   :  { %342 = vmatprep.subr.bf16.mxu0 %v411_v1 }
  0x1c   :  { %359 = vmatpush3.bf16.msra.mxu1 %v384_v14  ;;  %v153_v26 = vxor.u32 %v152_v25, %v151_v24 }
  0x1d   :  { %360 = vmatprep.subr.bf16.mxu1 %v411_v1 }
  0x1e   :  { %343 = vmatpush3.bf16.msra.mxu0 %v378_v13  ;;  %v154_v27 = vmul.u32 2146121005, %v153_v26 }
  0x20   :  { %361 = vmatpush3.bf16.msra.mxu1 %v385_v16  ;;  %v155_v28 = vshrl.u32 %v154_v27, 15 }
  0x21   :  { %345 = vmatmul.mubr.bf16.vlgmr.msra.gmra.mrb[0].mxu0 %v26_v15  ;;  %362 = vmatprep.subr.bf16.mxu1 %v411_v1 }
  0x22   :  { %v156_v29 = vxor.u32 %v155_v28, %v154_v27 }
  0x24   :  { %363 = vmatpush3.bf16.msra.mxu1 %v386_v17  ;;  %v157_v30 = vmul.u32 2221713035, %v156_v29 }
  0x26   :  { %v158_v31 = vshrl.u32 %v157_v30, 16 }
  0x28   :  { %v159_v32 = vxor.u32 %v158_v31, %v157_v30 }
  0x2a   :  { %vm160_vm1 = vcmp.ge.u32.totalorder %v159_v32, 1288490189 }
  0x2b   :  { %vm307_vm2 = vmpackc.low %vm160_vm1, %vm160_vm1 }
  0xf4   :  { %v132_v34 = vpop.f32.mrb[0].mxu0 }
  0xf5   :  { %v133_v35 = vadd.f32 %v289_v33, %v132_v34  ;;  %v346_v36 = vpop.f32.mrb[1].mxu0 }
  0xf6   :  { %v135_v37 = vpop.f32.mrb[2].mxu0 }
  0xf7   :  { %v138_v38 = vmax.f32 %v133_v35, 0.0  ;;  %v347_v39 = vpop.f32.mrb[3].mxu0 }
  0xf9   :  { %v308_v40 = vpack.c.bf16 %v138_v38, %v138_v38 }
  0xfb   :  { %365 = vmatmul.mubr.msk.bf16.vlgmr.msra.gmra.mrb[0].mxu1 %vm307_vm2, %v308_v40 }
 0x1ce   :  { %v268_v42 = vpop.f32.mrb[0].mxu1 }
 0x1cf   :  { %v269_v43 = vadd.f32 %v298_v41, %v268_v42  ;;  %v366_v44 = vpop.f32.mrb[1].mxu1 }
 0x1d0   :  { %v271_v45 = vpop.f32.mrb[2].mxu1 }
 0x1d1   :  { %274 = vst [vmem:[#allocation3] sm:$0xff] %v269_v43  ;;  %v367_v46 = vpop.f32.mrb[3].mxu1 }
 0x1d2   :  { %398 = shalt.err (!%p395_p4)
}
 0x1d3   :  { %s399_s5 = scalar_lea.hbm %s527_s6, 128 }
 0x1d4   :  { %p400_p5 = scmp.ne.s32.totalorder %s527_s6, %s399_s5  ;;  %p403_p6 = scmp.lt.u32.totalorder %s399_s5, %s527_s6 }
 0x1d6   :  { %p405_p7 = pnand %p403_p6, %p400_p5 }
 0x1d8   :  { %408 = shalt.err (!%p405_p7)
}
 0x1d9   :  { %284 = dma.vmem_to_hbm [thread:$0]  %s282_s11, 128, %s527_s6, [#allocation4]  }
 0x1da   :  { %409 = dma.done.wait [#allocation4], 128  }
 0x1db   :  { %410 = vsyncadd [#allocation4], 4294967168 }
 0x1dc   :  { %288 = vsyncpa [#allocation4], 1 }

</bundles_post_ra>
